<compile_context>
chip_gen: v7x
topology: tpu7x:2x2x1
jax: 0.10.0
libtpu: 0.0.40
codegen_flags: <defaults>
</compile_context>

<pallas_src>
import random
from functools import lru_cache

import numpy as np
import jax
import jax.numpy as jnp
from jax.experimental import pallas as pl
from jax.experimental.pallas import tpu as pltpu


# ------------------------------------------------------------------ glue -----
def _round_up(x, m):
    return ((x + m - 1) // m) * m


def _output_hw(h, w, size, max_size):
    """torchvision int-size rule: smaller edge -> size, clamp long edge to max_size."""
    short, long = (w, h) if w <= h else (h, w)
    new_short, new_long = size, int(size * long / short)
    if max_size is not None and new_long > max_size:
        new_short, new_long = int(max_size * new_short / new_long), max_size
    new_w, new_h = (new_short, new_long) if w <= h else (new_long, new_short)
    return new_h, new_w


def _resize_weight_matrix(in_size, out_size, antialias=True):
    """Dense (out_size, in_size) bilinear (triangle filter) resize weights,
    matching PyTorch's antialiased separable upsample weight computation."""
    scale = in_size / out_size
    support = max(scale, 1.0) if antialias else 1.0
    invscale = 1.0 / support
    W = np.zeros((out_size, in_size), dtype=np.float32)
    for i in range(out_size):
        center = scale * (i + 0.5)
        xmin = max(int(center - support + 0.5), 0)
        xmax = min(int(center + support + 0.5), in_size)
        js = np.arange(xmin, xmax, dtype=np.float64)
        wgt = np.maximum(0.0, 1.0 - np.abs((js + 0.5 - center) * invscale))
        s = wgt.sum()
        if s > 0:
            wgt = wgt / s
        W[i, xmin:xmax] = wgt.astype(np.float32)
    return W


def _vmem_capacity_bytes():
    try:
        return int(pltpu.get_tpu_info().vmem_capacity_bytes)
    except Exception:
        return 64 << 20            # conservative fallback (v7x per-core VMEM)


# ---------------------------------------------------- cached kernel builder --
@lru_cache(maxsize=None)
def _build_resize_fn(b, h, w, out_h, out_w, dtype_str, antialias):
    dtype = np.dtype(dtype_str)
    item = dtype.itemsize

    # ---- pass order: cheaper contraction order (effective MXU sizes) ----------
    wp = _round_up(out_w, 128)
    ohp = _round_up(out_h, 8)
    width_first_cost = h * wp * (w + ohp)        # (TB*H,W)@(W,OW) then (OH,H)@(H,OW)
    height_first_cost = ohp * w * (h + wp)       # (OH,H)@(H,W)   then (TB*OH,W)@(W,OW)
    height_first = height_first_cost <= width_first_cost
    merge_width = (h % 8 == 0)                   # (TB*H,W) reshape layout-free only then

    # ---- weights (bf16 on the MXU; normalized in fp64/fp32 before the cast) ---
    if height_first:
        wh_rows = _round_up(out_h, 8)            # sublane-aligned pieces for the concat
        wh_np = np.zeros((wh_rows, h), np.float32)
        wh_np[:out_h] = _resize_weight_matrix(h, out_h, antialias)
    else:
        wh_rows = out_h
        wh_np = _resize_weight_matrix(h, out_h, antialias)
    ww_t_np = np.ascontiguousarray(_resize_weight_matrix(w, out_w, antialias).T)

    wh_dev = jnp.asarray(wh_np, dtype=jnp.bfloat16)
    ww_t_dev = jnp.asarray(ww_t_np, dtype=jnp.bfloat16)

    # ---- VMEM-aware TB: divisor of b (no input padding), >=4 grid steps -------
    def step_bytes(tb):
        in_blk = tb * h * w * item
        out_blk = tb * out_h * out_w * item
        inter = tb * (wh_rows * w if height_first else h * out_w)
        # double-buffered in/out blocks + f32 & bf16 intermediates + bf16 image copy
        return 2 * (in_blk + out_blk) + inter * 6 + tb * h * w * 2

    weight_bytes = 2 * 2 * (wh_rows * h + w * out_w)     # bf16, x2 buffers worst-case
    vmem_cap = _vmem_capacity_bytes()
    budget = int(0.75 * vmem_cap) - weight_bytes

    divisors = [d for d in range(1, b + 1) if b % d == 0 and d <= 32]
    fitting = [d for d in divisors if step_bytes(d) <= budget] or [1]
    # TODO(synk): if even tb=1 does not fit, tile H/W with banded weights.
    target_steps = 4 if b >= 4 else 1
    pipelined = [d for d in fitting if b // d >= target_steps]
    tb = max(pipelined) if pipelined else max(fitting)

    need = step_bytes(tb) + weight_bytes
    hard_cap = min(vmem_cap - (8 << 20), int(0.8 * vmem_cap))  # ~51 MiB v7x / ~102 MiB v5e/v6e
    vmem_limit = int(min(max(need * 3 // 2, 32 << 20), hard_cap))

    cdt = jnp.bfloat16

    # ---- kernel body (closes over the static plan) -----------------------------
    if height_first:
        def kernel(wh_ref, ww_t_ref, x_ref, o_ref):
            wh = wh_ref[...]                      # (wh_rows, H) bf16, zero rows >= out_h
            ww_t = ww_t_ref[...]                  # (W, out_w)   bf16
            # H-contraction per plane on the input (small for downscale); pieces are
            # 8-row aligned so the concat + the merged W-pass are layout-free.
            parts = [jnp.dot(wh, x_ref[i].astype(cdt), preferred_element_type=jnp.float32)
                     for i in range(tb)]          # each (wh_rows, W) f32
            t = parts[0] if tb == 1 else jnp.concatenate(parts, axis=0)
            # W-contraction: ONE merged MXU matmul over all TB planes.
            y = jnp.dot(t.astype(cdt), ww_t, preferred_element_type=jnp.float32)
            for i in range(tb):
                o_ref[i] = y[i * wh_rows:i * wh_rows + out_h].astype(o_ref.dtype)
    else:
        def kernel(wh_ref, ww_t_ref, x_ref, o_ref):
            wh = wh_ref[...]                      # (out_h, H) bf16
            ww_t = ww_t_ref[...]                  # (W, out_w) bf16
            if merge_width:
                # W-contraction first as ONE merged matmul over all TB planes.
                xm = x_ref[...].reshape(tb * h, w).astype(cdt)
                t = jnp.dot(xm, ww_t, preferred_element_type=jnp.float32)  # (TB*H, out_w)
                for i in range(tb):
                    o_ref[i] = jnp.dot(wh, t[i * h:(i + 1) * h].astype(cdt),
                                       preferred_element_type=jnp.float32).astype(o_ref.dtype)
            else:
                # H % 8 != 0: merged reshape would relayout -> per-plane fallback.
                for i in range(tb):
                    ti = jnp.dot(x_ref[i].astype(cdt), ww_t,
                                 preferred_element_type=jnp.float32)
                    o_ref[i] = jnp.dot(wh, ti.astype(cdt),
                                       preferred_element_type=jnp.float32).astype(o_ref.dtype)

    # ---- pallas_call ------------------------------------------------------------
    def make_call(single_buffered_weights):
        def wspec(shape):
            if single_buffered_weights:           # resident weights: no double buffer
                return pl.BlockSpec(shape, lambda i: (0, 0), pipeline_mode=pl.Buffered(1))
            return pl.BlockSpec(shape, lambda i: (0, 0))

        call = pl.pallas_call(
            kernel,
            out_shape=jax.ShapeDtypeStruct((b, out_h, out_w), dtype),
            grid_spec=pltpu.PrefetchScalarGridSpec(
                num_scalar_prefetch=0,
                grid=(b // tb,),
                in_specs=[
                    wspec((wh_rows, h)),                          # Wh  (resident)
                    wspec((w, out_w)),                            # Ww^T (resident)
                    pl.BlockSpec((tb, h, w), lambda i: (i, 0, 0)),  # TB planes / step
                ],
                # true (out_h, out_w) block: no lane padding in HBM, no wrapper slice.
                out_specs=pl.BlockSpec((tb, out_h, out_w), lambda i: (i, 0, 0)),
            ),
            compiler_params=pltpu.CompilerParams(
                dimension_semantics=("parallel",),
                vmem_limit_bytes=vmem_limit,
            ),
        )
        return jax.jit(lambda x: call(wh_dev, ww_t_dev, x))

    state = {}

    def fn(x):                                    # x: (b, h, w)
        cached = state.get("fn")
        if cached is not None:
            return cached(x)
        last_err = None
        for single_buffered in (True, False):     # fall back if Buffered(1) is rejected
            try:
                cand = make_call(single_buffered)
                out = cand(x)
                jax.block_until_ready(out)
                state["fn"] = cand
                return out
            except Exception as e:
                last_err = e
        raise last_err

    return fn


def pallas_resize_bilinear(img, out_h, out_w, antialias=True):
    """img: (..., H, W) float -> (..., out_h, out_w), same dtype."""
    *lead, h, w = img.shape
    b = 1
    for d in lead:
        b *= int(d)
    fn = _build_resize_fn(int(b), int(h), int(w), int(out_h), int(out_w),
                          str(img.dtype), bool(antialias))
    out = fn(img.reshape(b, h, w))
    return out.reshape(*lead, out_h, out_w)


# ---------------------------------------------------------------- module -----
class RandomResizePallas:
    def __init__(self, sizes, max_size=None, antialias=True):
        self.sizes = sizes
        self.max_size = max_size
        self.antialias = antialias
        # interpolation fixed to BILINEAR (the module default)

    def __call__(self, img):
        size = random.choice(self.sizes)          # same semantics as the torch module
        h, w = img.shape[-2], img.shape[-1]
        out_h, out_w = _output_hw(h, w, size, self.max_size)
        return pallas_resize_bilinear(img, out_h, out_w, self.antialias)


# ------------------------------------------------------------------ main -----
if __name__ == "__main__":
    random.seed(0)                                # deterministic size choice
    key = jax.random.PRNGKey(0)

    N, C, H, W = 2, 4, 16, 16
    img = jax.random.uniform(key, (N, C, H, W), dtype=jnp.float32)
    img_np = np.asarray(img, np.float64)

    # 1) the module itself (random size; exercises the height-first path here)
    mod = RandomResizePallas(sizes=[8, 12, 24], max_size=None, antialias=True)
    out = mod(img)
    out = jax.block_until_ready(out)

    oh, ow = out.shape[-2], out.shape[-1]
    wh = _resize_weight_matrix(H, oh)
    ww = _resize_weight_matrix(W, ow)
    ref = np.einsum("oh,nchw,pw->ncop", wh, img_np, ww)
    # bf16 MXU inputs -> relaxed tolerance (visually negligible for resize)
    np.testing.assert_allclose(np.asarray(out, np.float64), ref, rtol=2e-2, atol=2e-2)

    # 2) a tall upscale that selects the width-first merged path
    out2 = pallas_resize_bilinear(img, 320, 72)
    out2 = jax.block_until_ready(out2)
    wh2 = _resize_weight_matrix(H, 320)
    ww2 = _resize_weight_matrix(W, 72)
    ref2 = np.einsum("oh,nchw,pw->ncop", wh2, img_np, ww2)
    np.testing.assert_allclose(np.asarray(out2, np.float64), ref2, rtol=2e-2, atol=2e-2)

    print("KERNEL_OK")
</pallas_src>

<mosaic_0001>
module attributes {stable_mosaic.version = 11 : i64} {
  func.func @kernel(%arg0: i32, %arg1: memref<16x16xbf16, #tpu.memory_space<vmem>>, %arg2: memref<16x12xbf16, #tpu.memory_space<vmem>>, %arg3: memref<2x16x16xf32, #tpu.memory_space<vmem>>, %arg4: memref<2x12x12xf32, #tpu.memory_space<vmem>>) attributes {dimension_semantics = [#tpu.dimension_semantics<parallel>], iteration_bounds = array<i64: 4>, scalar_prefetch = 0 : i64, scratch_operands = 0 : i64, tpu.core_type = #tpu.core_type<tc>, window_params = [{pipeline_mode = #tpu.pipeline_mode<synchronous>, transform_indices = @transform_0, window_bounds = array<i64: 16, 16>}, {pipeline_mode = #tpu.pipeline_mode<synchronous>, transform_indices = @transform_1, window_bounds = array<i64: 16, 12>}, {transform_indices = @transform_2, window_bounds = array<i64: 2, 16, 16>}, {transform_indices = @transform_3, window_bounds = array<i64: 2, 12, 12>}]} {
    %c0 = arith.constant 0 : index
    %c0_0 = arith.constant 0 : index
    %0 = vector.load %arg1[%c0, %c0_0] : memref<16x16xbf16, #tpu.memory_space<vmem>>, vector<16x16xbf16>
    %c0_1 = arith.constant 0 : index
    %c0_2 = arith.constant 0 : index
    %1 = vector.load %arg2[%c0_1, %c0_2] : memref<16x12xbf16, #tpu.memory_space<vmem>>, vector<16x12xbf16>
    %c0_3 = arith.constant 0 : index
    %c0_4 = arith.constant 0 : index
    %c0_5 = arith.constant 0 : index
    %2 = vector.load %arg3[%c0_3, %c0_4, %c0_5] : memref<2x16x16xf32, #tpu.memory_space<vmem>>, vector<1x16x16xf32>
    %3 = vector.shape_cast %2 : vector<1x16x16xf32> to vector<16x16xf32>
    %4 = arith.truncf %3 : vector<16x16xf32> to vector<16x16xbf16>
    %cst = arith.constant dense<0.000000e+00> : vector<16x16xf32>
    %5 = tpu.matmul %0, %4, %cst {dimension_numbers = #tpu.dot_dimension_numbers<[1], [0], [0], [1], [0, 0, 1, 1], [], []>} : vector<16x16xbf16>, vector<16x16xbf16>, vector<16x16xf32> -> vector<16x16xf32>
    %c1 = arith.constant 1 : index
    %c0_6 = arith.constant 0 : index
    %c0_7 = arith.constant 0 : index
    %6 = vector.load %arg3[%c1, %c0_6, %c0_7] : memref<2x16x16xf32, #tpu.memory_space<vmem>>, vector<1x16x16xf32>
    %7 = vector.shape_cast %6 : vector<1x16x16xf32> to vector<16x16xf32>
    %8 = arith.truncf %7 : vector<16x16xf32> to vector<16x16xbf16>
    %cst_8 = arith.constant dense<0.000000e+00> : vector<16x16xf32>
    %9 = tpu.matmul %0, %8, %cst_8 {dimension_numbers = #tpu.dot_dimension_numbers<[1], [0], [0], [1], [0, 0, 1, 1], [], []>} : vector<16x16xbf16>, vector<16x16xbf16>, vector<16x16xf32> -> vector<16x16xf32>
    %10 = tpu.concatenate %5, %9 in 0 : vector<16x16xf32>, vector<16x16xf32> -> vector<32x16xf32>
    %11 = arith.truncf %10 : vector<32x16xf32> to vector<32x16xbf16>
    %cst_9 = arith.constant dense<0.000000e+00> : vector<32x12xf32>
    %12 = tpu.matmul %11, %1, %cst_9 {dimension_numbers = #tpu.dot_dimension_numbers<[1], [0], [0], [1], [0, 0, 1, 1], [], []>} : vector<32x16xbf16>, vector<16x12xbf16>, vector<32x12xf32> -> vector<32x12xf32>
    %13 = vector.extract_strided_slice %12 {offsets = [0, 0], sizes = [12, 12], strides = [1, 1]} : vector<32x12xf32> to vector<12x12xf32>
    %c0_10 = arith.constant 0 : index
    %c0_11 = arith.constant 0 : index
    %c0_12 = arith.constant 0 : index
    %14 = vector.load %arg4[%c0_10, %c0_11, %c0_12] : memref<2x12x12xf32, #tpu.memory_space<vmem>>, vector<1x12x12xf32>
    %15 = vector.shape_cast %14 : vector<1x12x12xf32> to vector<12x12xf32>
    %16 = vector.shape_cast %13 : vector<12x12xf32> to vector<1x12x12xf32>
    tpu.vector_store %arg4[%c0_10, %c0_11, %c0_12], %16 {strides = array<i32>} : memref<2x12x12xf32, #tpu.memory_space<vmem>>, vector<1x12x12xf32>,
    %17 = vector.extract_strided_slice %12 {offsets = [16, 0], sizes = [12, 12], strides = [1, 1]} : vector<32x12xf32> to vector<12x12xf32>
    %c1_13 = arith.constant 1 : index
    %c0_14 = arith.constant 0 : index
    %c0_15 = arith.constant 0 : index
    %18 = vector.load %arg4[%c1_13, %c0_14, %c0_15] : memref<2x12x12xf32, #tpu.memory_space<vmem>>, vector<1x12x12xf32>
    %19 = vector.shape_cast %18 : vector<1x12x12xf32> to vector<12x12xf32>
    %20 = vector.shape_cast %17 : vector<12x12xf32> to vector<1x12x12xf32>
    tpu.vector_store %arg4[%c1_13, %c0_14, %c0_15], %20 {strides = array<i32>} : memref<2x12x12xf32, #tpu.memory_space<vmem>>, vector<1x12x12xf32>,
    return
  }
  func.func @transform_0(%arg0: i32) -> (i32, i32) {
    %c0_i32 = arith.constant 0 : i32
    %c0_i32_0 = arith.constant 0 : i32
    %c0_i32_1 = arith.constant 0 : i32
    return %c0_i32, %c0_i32_0 : i32, i32
  }
  func.func @transform_1(%arg0: i32) -> (i32, i32) {
    %c0_i32 = arith.constant 0 : i32
    %c0_i32_0 = arith.constant 0 : i32
    %c0_i32_1 = arith.constant 0 : i32
    return %c0_i32, %c0_i32_0 : i32, i32
  }
  func.func @transform_2(%arg0: i32) -> (i32, i32, i32) {
    %c0_i32 = arith.constant 0 : i32
    %c0_i32_0 = arith.constant 0 : i32
    %c0_i32_1 = arith.constant 0 : i32
    return %arg0, %c0_i32, %c0_i32_0 : i32, i32, i32
  }
  func.func @transform_3(%arg0: i32) -> (i32, i32, i32) {
    %c0_i32 = arith.constant 0 : i32
    %c0_i32_0 = arith.constant 0 : i32
    %c0_i32_1 = arith.constant 0 : i32
    return %arg0, %c0_i32, %c0_i32_0 : i32, i32, i32
  }
}

module attributes {stable_mosaic.version = 11 : i64} {
  func.func @kernel(%arg0: i32, %arg1: memref<16x16xbf16, #tpu.memory_space<vmem>>, %arg2: memref<16x12xbf16, #tpu.memory_space<vmem>>, %arg3: memref<2x16x16xf32, #tpu.memory_space<vmem>>, %arg4: memref<2x12x12xf32, #tpu.memory_space<vmem>>) attributes {dimension_semantics = [#tpu.dimension_semantics<parallel>], iteration_bounds = array<i64: 4>, scalar_prefetch = 0 : i64, scratch_operands = 0 : i64, tpu.core_type = #tpu.core_type<tc>, window_params = [{pipeline_mode = #tpu.pipeline_mode<synchronous>, transform_indices = @transform_0, window_bounds = array<i64: 16, 16>}, {pipeline_mode = #tpu.pipeline_mode<synchronous>, transform_indices = @transform_1, window_bounds = array<i64: 16, 12>}, {transform_indices = @transform_2, window_bounds = array<i64: 2, 16, 16>}, {transform_indices = @transform_3, window_bounds = array<i64: 2, 12, 12>}]} {
    %c0 = arith.constant 0 : index
    %c0_0 = arith.constant 0 : index
    %0 = vector.load %arg1[%c0, %c0_0] : memref<16x16xbf16, #tpu.memory_space<vmem>>, vector<16x16xbf16>
    %c0_1 = arith.constant 0 : index
    %c0_2 = arith.constant 0 : index
    %1 = vector.load %arg2[%c0_1, %c0_2] : memref<16x12xbf16, #tpu.memory_space<vmem>>, vector<16x12xbf16>
    %c0_3 = arith.constant 0 : index
    %c0_4 = arith.constant 0 : index
    %c0_5 = arith.constant 0 : index
    %2 = vector.load %arg3[%c0_3, %c0_4, %c0_5] : memref<2x16x16xf32, #tpu.memory_space<vmem>>, vector<1x16x16xf32>
    %3 = vector.shape_cast %2 : vector<1x16x16xf32> to vector<16x16xf32>
    %4 = arith.truncf %3 : vector<16x16xf32> to vector<16x16xbf16>
    %cst = arith.constant dense<0.000000e+00> : vector<16x16xf32>
    %5 = tpu.matmul %0, %4, %cst {dimension_numbers = #tpu.dot_dimension_numbers<[1], [0], [0], [1], [0, 0, 1, 1], [], []>} : vector<16x16xbf16>, vector<16x16xbf16>, vector<16x16xf32> -> vector<16x16xf32>
    %c1 = arith.constant 1 : index
    %c0_6 = arith.constant 0 : index
    %c0_7 = arith.constant 0 : index
    %6 = vector.load %arg3[%c1, %c0_6, %c0_7] : memref<2x16x16xf32, #tpu.memory_space<vmem>>, vector<1x16x16xf32>
    %7 = vector.shape_cast %6 : vector<1x16x16xf32> to vector<16x16xf32>
    %8 = arith.truncf %7 : vector<16x16xf32> to vector<16x16xbf16>
    %cst_8 = arith.constant dense<0.000000e+00> : vector<16x16xf32>
    %9 = tpu.matmul %0, %8, %cst_8 {dimension_numbers = #tpu.dot_dimension_numbers<[1], [0], [0], [1], [0, 0, 1, 1], [], []>} : vector<16x16xbf16>, vector<16x16xbf16>, vector<16x16xf32> -> vector<16x16xf32>
    %10 = tpu.concatenate %5, %9 in 0 : vector<16x16xf32>, vector<16x16xf32> -> vector<32x16xf32>
    %11 = arith.truncf %10 : vector<32x16xf32> to vector<32x16xbf16>
    %cst_9 = arith.constant dense<0.000000e+00> : vector<32x12xf32>
    %12 = tpu.matmul %11, %1, %cst_9 {dimension_numbers = #tpu.dot_dimension_numbers<[1], [0], [0], [1], [0, 0, 1, 1], [], []>} : vector<32x16xbf16>, vector<16x12xbf16>, vector<32x12xf32> -> vector<32x12xf32>
    %13 = vector.extract_strided_slice %12 {offsets = [0, 0], sizes = [12, 12], strides = [1, 1]} : vector<32x12xf32> to vector<12x12xf32>
    %c0_10 = arith.constant 0 : index
    %c0_11 = arith.constant 0 : index
    %c0_12 = arith.constant 0 : index
    %14 = vector.load %arg4[%c0_10, %c0_11, %c0_12] : memref<2x12x12xf32, #tpu.memory_space<vmem>>, vector<1x12x12xf32>
    %15 = vector.shape_cast %14 : vector<1x12x12xf32> to vector<12x12xf32>
    %16 = vector.shape_cast %13 : vector<12x12xf32> to vector<1x12x12xf32>
    tpu.vector_store %arg4[%c0_10, %c0_11, %c0_12], %16 {strides = array<i32>} : memref<2x12x12xf32, #tpu.memory_space<vmem>>, vector<1x12x12xf32>,
    %17 = vector.extract_strided_slice %12 {offsets = [16, 0], sizes = [12, 12], strides = [1, 1]} : vector<32x12xf32> to vector<12x12xf32>
    %c1_13 = arith.constant 1 : index
    %c0_14 = arith.constant 0 : index
    %c0_15 = arith.constant 0 : index
    %18 = vector.load %arg4[%c1_13, %c0_14, %c0_15] : memref<2x12x12xf32, #tpu.memory_space<vmem>>, vector<1x12x12xf32>
    %19 = vector.shape_cast %18 : vector<1x12x12xf32> to vector<12x12xf32>
    %20 = vector.shape_cast %17 : vector<12x12xf32> to vector<1x12x12xf32>
    tpu.vector_store %arg4[%c1_13, %c0_14, %c0_15], %20 {strides = array<i32>} : memref<2x12x12xf32, #tpu.memory_space<vmem>>, vector<1x12x12xf32>,
    return
  }
  func.func @transform_0(%arg0: i32) -> (i32, i32) {
    %c0_i32 = arith.constant 0 : i32
    %c0_i32_0 = arith.constant 0 : i32
    %c0_i32_1 = arith.constant 0 : i32
    return %c0_i32, %c0_i32_0 : i32, i32
  }
  func.func @transform_1(%arg0: i32) -> (i32, i32) {
    %c0_i32 = arith.constant 0 : i32
    %c0_i32_0 = arith.constant 0 : i32
    %c0_i32_1 = arith.constant 0 : i32
    return %c0_i32, %c0_i32_0 : i32, i32
  }
  func.func @transform_2(%arg0: i32) -> (i32, i32, i32) {
    %c0_i32 = arith.constant 0 : i32
    %c0_i32_0 = arith.constant 0 : i32
    %c0_i32_1 = arith.constant 0 : i32
    return %arg0, %c0_i32, %c0_i32_0 : i32, i32, i32
  }
  func.func @transform_3(%arg0: i32) -> (i32, i32, i32) {
    %c0_i32 = arith.constant 0 : i32
    %c0_i32_0 = arith.constant 0 : i32
    %c0_i32_1 = arith.constant 0 : i32
    return %arg0, %c0_i32, %c0_i32_0 : i32, i32, i32
  }
}

</mosaic_0001>

<bundles_post_ra>
// kernel: _lambda_.1
= control target key start
LH: loop header
LB: loop body
LE: loop exit
PB: predicated region body
PF: predicated region fallthrough
CT: control target
= control target key end

     0   :  { %8 = vsyncpa [#allocation3], 0  ;;  %s856_s0 = inlined_call_operand.hbm [shape: bf16[16,16], index: 0, kind: input, shape index: {}]   ;;  %s857_s1 = inlined_call_operand.vmem [shape: bf16[16,12], index: 1, kind: input, shape index: {}]   ;;  %s858_s2 = inlined_call_operand.hbm [shape: f32[8,16,16], index: 2, kind: input, shape index: {}]   ;;  %s859_s3 = inlined_call_operand.vmem [shape: f32[8,12,12], index: 3, kind: output, shape index: {}]  }
   0x1   :  { %9 = vsyncpa [#allocation5], 0 }
   0x2   :  { %11 = vsyncpa [#allocation5 + $0x1], 0  ;;  %s704_s12 = smov 0   ;;  %s706_s13 = smov 0  }
   0x3   :  { %s708_s14 = smov 0   ;;  %s710_s15 = smov 0  }
   0x4 LB: > { %s465_s16 = sadd.s32 4294967295, %s674_s15   ;;  %p79_p0 = scmp.ne.s32.totalorder %s666_s13, %s662_s12  ;;  %s674_s15 = sphi %s710_s15, %s875_s15   ;;  %s670_s14 = sphi %s708_s14, %s874_s14   ;;  %s666_s13 = sphi %s706_s13, %s873_s13   ;;  %s662_s12 = sphi %s704_s12, %s872_s12  }
   0x5   : > { %p726_p1 = scmp.eq.s32.totalorder %s465_s16, 0  ;;  %p467_p2 = scmp.ge.s32.totalorder %s674_s15, 1 }
   0x6   : > { %p116_p3 = scmp.lt.s32.totalorder %s674_s15, 5  ;;  %s676_s20 = smov [#allocation2]  }
   0x7   : > { %s864_s17 = scalar_select %p726_p1, 1, 0 }
   0x8   : > { %p734_p4 = por %p726_p1, %p79_p0  ;;  %p738_p5 = pnand %p467_p2, %p116_p3 }
   0x9   : > { %s128_s21 = sshll.u32 %s676_s20, 4  ;;  %s751_s23 = sadd.s32 1, %s674_s15   ;;  %s129_s21 = int_to_ptr.vmem [resolvable:$true] %s128_s21 }
   0xa   : > { %s865_s18 = scalar_select %p734_p4, 1, 0 }
   0xb   : > { %s866_s19 = scalar_select %p738_p5, 1, 0 }
   0xc   : > { %p526_p6 = pneg %p738_p5  ;;  %s66_s24 = sadd.s32 1, %s670_s14 }
   0xd   : > { %s63_s25 = ssub.s32 %s674_s15, %s751_s23  ;;  %s578_s28 = scalar_lea.hbm %s856_s0, 128 }
   0xe   : > { %p746_p7 = pnand %p526_p6, %p726_p1  ;;  %p579_p8 = scmp.ne.s32.totalorder %s856_s0, %s578_s28 }
   0xf   : > { %p585_p12 = scmp.lt.u32.totalorder %s578_s28, %s856_s0 }
  0x10   : > { %p580_p9 = pneg %p746_p7 }
  0x12   : > { %p581_p10 = pnand %p580_p9, %p579_p8 }
  0x14   : > { %p582_p11 = pneg %p581_p10 }
  0x16   : > { %p587_p13 = pnand %p585_p12, %p582_p11 }
  0x18   : > { %590 = shalt.err (!%p587_p13)
}
  0x19   : > { %s591_s6 = scalar_lea.vmem %s129_s21, 128  ;;  %p599_p6 = scmp.lt.s32.totalorder %s129_s21, %s129_s21 }
  0x1a   : > { %p592_p0 = scmp.ne.s32.totalorder %s129_s21, %s591_s6  ;;  %p600_p4 = scmp.lt.s32.totalorder %s591_s6, %s591_s6 }
  0x1c   : > { %p594_p2 = pnand %p592_p0, %p580_p9  ;;  %p601_p1 = por %p600_p4, %p599_p6 }
  0x1e   : > { %p595_p3 = pneg %p594_p2 }
  0x20   : > { %p602_p5 = pnand %p601_p1, %p595_p3 }
  0x22   : > { %605 = shalt.err (!%p602_p5)
}
  0x23   : > { %s677_s7 = smov 64   ;;  %s678_s8 = smov 4  }
  0x24   : > { %529 = dma.hbm_to_vmem [thread:$0]  (!%p746_p7), %s856_s0, 128, %s129_s21, [#allocation3], %s677_s7, %s677_s7, %s678_s8  }
  0x25   : > { %p64_p8 = scmp.eq.s32.totalorder %s63_s25, 0  ;;  %p73_p9 = scmp.ne.s32.totalorder %s670_s14, %s666_s13 }
  0x26   : > { %p74_p4 = scmp.eq.s32.totalorder %s674_s15, 0  ;;  %p535_p1 = scmp.lt.s32.totalorder %s674_s15, 4 }
  0x27   : > { %s777_s11 = scalar_select %p64_p8, %s670_s14, %s66_s24  }
  0x28   : > { %p75_p5 = por %p74_p4, %p73_p9  ;;  %s145_s12 = sand.u32 1, %s670_s14  }
  0x29   : > { %s470_s20 = sshll.u32 %s145_s12, 5  ;;  %s493_s26 = sshll.u32 %s674_s15, 9 }
  0x2a   : > { %s784_s29 = scalar_lea.hbm %s858_s2, %s493_s26  ;;  %s149_s21 = scalar_lea.vmem [#allocation4], %s470_s20 }
  0x2b   : > { %s157_s22 = sshll.u32 %s149_s21, 4  ;;  %p788_p7 = pnand %p535_p1, %p75_p5  ;;  %s786_s22 = int_to_ptr.vmem [resolvable:$true] %s157_s22 }
  0x2c   : > { %s792_s25 = scalar_lea.sflag [#allocation5], %s145_s12  ;;  %s606_s30 = scalar_lea.hbm %s784_s29, 512 }
  0x2d   : > { %p607_p10 = scmp.ne.s32.totalorder %s784_s29, %s606_s30  ;;  %p608_p11 = pneg %p788_p7 }
  0x2e   : > { %s611_s6 = scalar_lea.hbm %s858_s2, 2048  ;;  %p612_p0 = scmp.lt.u32.totalorder %s784_s29, %s858_s2 }
  0x2f   : > { %p609_p12 = pnand %p608_p11, %p607_p10  ;;  %p613_p2 = scmp.lt.u32.totalorder %s611_s6, %s606_s30 }
  0x30   : > { %p615_p6 = scmp.lt.u32.totalorder %s606_s30, %s784_s29 }
  0x31   : > { %p610_p13 = pneg %p609_p12  ;;  %p614_p3 = por %p613_p2, %p612_p0 }
  0x33   : > { %p616_p8 = por %p615_p6, %p614_p3 }
  0x35   : > { %p617_p9 = pnand %p616_p8, %p610_p13 }
  0x37   : > { %620 = shalt.err (!%p617_p9)
}
  0x38   : > { %s621_s9 = scalar_lea.vmem %s786_s22, 512  ;;  %s679_s10 = smov [#allocation4]  }
  0x39   : > { %p622_p4 = scmp.ne.s32.totalorder %s786_s22, %s621_s9  ;;  %s626_s12 = sshll.u32 %s679_s10, 4  ;;  %s627_s12 = int_to_ptr.vmem [resolvable:$false] %s626_s12 }
  0x3a   : > { %s628_s20 = scalar_lea.vmem %s627_s12, 1024  ;;  %p629_p10 = scmp.lt.s32.totalorder %s786_s22, %s627_s12 }
  0x3b   : > { %p624_p1 = pnand %p622_p4, %p608_p11  ;;  %p630_p12 = scmp.lt.s32.totalorder %s628_s20, %s621_s9 }
  0x3d   : > { %p625_p5 = pneg %p624_p1  ;;  %p631_p0 = por %p630_p12, %p629_p10 }
  0x3f   : > { %p632_p2 = pnand %p631_p0, %p625_p5 }
  0x41   : > { %635 = shalt.err (!%p632_p2)
}
  0x42   : > { %s680_s26 = smov 128   ;;  %s681_s27 = smov 8  }
  0x43   : > { %533 = dma.hbm_to_vmem [thread:$0]  (!%p788_p7), %s784_s29, 512, %s786_s22, %s792_s25, %s680_s26, %s680_s26, %s681_s27  }
  0x44   : > { %p869_p11 = scmp.ne.s32.totalorder %s866_s19, 0 }
  0x45   : > { %p870_p13 = scmp.ne.s32.totalorder (!%p869_p11), %s864_s17, 0 }
  0x46   : > { %169 = sbr.rel (%p869_p11) target bundleno = 521 (0x209), region = 32 }
  0x4d   : > { %653 = dma.done.wait (%p870_p13), [#allocation3], 128  }
  0x4e   : > { %655 = vsyncadd (%p870_p13), [#allocation3], 4294967168  ;;  %s175_s28 = sand.u32 1, %s666_s13   ;;  %p871_p3 = scmp.ne.s32.totalorder %s865_s18, 0 }
  0x4f   : > { %s476_s21 = sshll.u32 %s175_s28, 5  ;;  %s176_s30 = scalar_lea.sflag [#allocation5], %s175_s28 }
  0x50   : > { %s179_s4 = scalar_lea.vmem [#allocation4], %s476_s21 }
  0x51   : > { %657 = dma.done.wait (%p871_p3), %s176_s30, 512  }
  0x52   : > { %659 = vsyncadd (%p871_p3), %s176_s30, 4294966784  ;;  %v682_v0 = vmov 0.0   ;;  %vm683_vm0 = vmmov 0   ;;  %v216_v1 = vld [vmem:[%s179_s4] sm:$0xff]  ;;  %v217_v2 = vld [vmem:[%s179_s4 + $0x8] sm:$0xff]  ;;  %vm224_vm1 = vcmask 130048  }
  0x53   : > { %502 = vmatprep.subr.bf16.mxu0 %v682_v0  ;;  %508 = vmatprep.subr.bf16.mxu1 %v682_v0  ;;  %v482_v3 = vld [vmem:[%s179_s4 + $0x10] sm:$0xff]  ;;  %v218_v4 = vpack.c.bf16 %v217_v2, %v216_v1  ;;  %v483_v5 = vld [vmem:[%s179_s4 + $0x18] sm:$0xff]  ;;  %s477_s18 = sshll.u32 %s465_s16, 1  ;;  %vm377_vm2 = vcmask 97280   ;;  %vm379_vm3 = vcmask 93184  }
  0x54   : > { %504 = vmatprep.mubr.msk.bf16.mxu0 %vm683_vm0, %v682_v0  ;;  %510 = vmatprep.mubr.msk.bf16.mxu1 %vm683_vm0, %v682_v0  ;;  %v272_v6 = vpack.c.bf16 %v483_v5, %v482_v3  ;;  %v576_v7 = vld [vmem:[#allocation2] sm:$0xff]   ;;  %p205_p7 = scmp.lt.s32.totalorder %s477_s18, 7 }
  0x55   : > { %503 = vmatpush3.bf16.msra.mxu0 %v218_v4  ;;  %v577_v8 = vld [vmem:[%s857_s1] sm:$0xff]  }
  0x56   : > { %509 = vmatpush3.bf16.msra.mxu1 %v272_v6  ;;  %514 = vmatprep.subr.bf16.mxu0 %v577_v8  ;;  %s877_s18 = smov (!%p205_p7, %s477_s18), 7 }
  0x57   : > { %s494_s29 = sshll.u32 %s877_s18, 4 }
  0x58   : > { %505 = vmatmul.mubr.msk.bf16.vlgmr.msra.gmra.mrb[0].mxu0 %vm224_vm1, %v576_v7  ;;  %s209_s25 = scalar_lea.vmem %s859_s3, %s494_s29 }
  0x59   : > { %511 = vmatmul.mubr.msk.bf16.vlgmr.msra.gmra.mrb[0].mxu1 %vm224_vm1, %v576_v7  ;;  %515 = vmatpush3.bf16.msra.mxu0 %v577_v8 }
 0x12b   : > { %v262_v9 = vpop.f32.mrb[0].mxu0 }
 0x12c   : > { %v307_v10 = vpop.f32.mrb[0].mxu1  ;;  %v506_v11 = vpop.f32.mrb[1].mxu0 }
 0x12d   : > { %v512_v12 = vpop.f32.mrb[1].mxu1  ;;  %v265_v13 = vpop.f32.mrb[2].mxu0 }
 0x12e   : > { %v314_v14 = vpack.c.bf16 %v265_v13, %v262_v9  ;;  %v310_v15 = vpop.f32.mrb[2].mxu1  ;;  %v507_v16 = vpop.f32.mrb[3].mxu0 }
 0x12f   : > { %v315_v17 = vpack.c.bf16 %v310_v15, %v307_v10  ;;  %v513_v18 = vpop.f32.mrb[3].mxu1 }
 0x130   : > { %516 = vmatprep.mubr.msk.bf16.mxu0 %vm224_vm1, %v314_v14 }
 0x131   : > { %517 = vmatmul.mubr.msk.bf16.vlgmr.msra.gmra.mrb[4].mxu0 %vm224_vm1, %v315_v17 }
 0x204   : > { %v518_v19 = vpop.f32.mrb[4].mxu0 }
 0x205   : > { %v362_v20 = vpop.f32.mrb[5].mxu0  ;;  %488 = vst.msk [vmem:[%s209_s25 + $0x10] sm:$0xff] %vm377_vm2, %v518_v19 }
 0x206   : > { %378 = vst.msk [vmem:[%s209_s25] sm:$0xff] %vm377_vm2, %v362_v20  ;;  %v519_v21 = vpop.f32.mrb[6].mxu0 }
 0x207   : > { %v365_v22 = vpop.f32.mrb[7].mxu0  ;;  %489 = vst.msk [vmem:[%s209_s25 + $0x18] sm:$0xf] %vm379_vm3, %v519_v21 }
 0x208   : > { %380 = vst.msk [vmem:[%s209_s25 + $0x8] sm:$0xf] %vm379_vm3, %v365_v22 }
 0x209 PF: > { %p14_p6 = scmp.ge.s32.totalorder %s751_s23, 6   ;;  %s872_s12 = smov %s666_s13 }
 0x20a   : > { %s873_s13 = smov %s670_s14  ;;  %s874_s14 = smov %s777_s11 }
 0x20b   : > { %s875_s15 = smov %s751_s23  ;;  %16 = sbr.rel (!%p14_p6) target bundleno = 4 (0x4), region = 79 }
 0x212   :  { %408 = vsyncpa [#allocation3], 1 }
 0x213   :  { %410 = vsyncpa [#allocation3 + $0x1], 1 }
 0x214   :  { %411 = vsyncpa [#allocation5], 1 }
 0x215   :  { %413 = vsyncpa [#allocation5 + $0x1], 1 }

// kernel: _lambda_.1
= control target key start
LH: loop header
LB: loop body
LE: loop exit
PB: predicated region body
PF: predicated region fallthrough
CT: control target
= control target key end

     0   :  { %8 = vsyncpa [#allocation3], 0  ;;  %s856_s0 = inlined_call_operand.hbm [shape: bf16[16,16], index: 0, kind: input, shape index: {}]   ;;  %s857_s1 = inlined_call_operand.vmem [shape: bf16[16,12], index: 1, kind: input, shape index: {}]   ;;  %s858_s2 = inlined_call_operand.hbm [shape: f32[8,16,16], index: 2, kind: input, shape index: {}]   ;;  %s859_s3 = inlined_call_operand.vmem [shape: f32[8,12,12], index: 3, kind: output, shape index: {}]  }
   0x1   :  { %9 = vsyncpa [#allocation5], 0 }
   0x2   :  { %11 = vsyncpa [#allocation5 + $0x1], 0  ;;  %s704_s12 = smov 0   ;;  %s706_s13 = smov 0  }
   0x3   :  { %s708_s14 = smov 0   ;;  %s710_s15 = smov 0  }
   0x4 LB: > { %s465_s16 = sadd.s32 4294967295, %s674_s15   ;;  %p79_p0 = scmp.ne.s32.totalorder %s666_s13, %s662_s12  ;;  %s674_s15 = sphi %s710_s15, %s875_s15   ;;  %s670_s14 = sphi %s708_s14, %s874_s14   ;;  %s666_s13 = sphi %s706_s13, %s873_s13   ;;  %s662_s12 = sphi %s704_s12, %s872_s12  }
   0x5   : > { %p726_p1 = scmp.eq.s32.totalorder %s465_s16, 0  ;;  %p467_p2 = scmp.ge.s32.totalorder %s674_s15, 1 }
   0x6   : > { %p116_p3 = scmp.lt.s32.totalorder %s674_s15, 5  ;;  %s676_s20 = smov [#allocation2]  }
   0x7   : > { %s864_s17 = scalar_select %p726_p1, 1, 0 }
   0x8   : > { %p734_p4 = por %p726_p1, %p79_p0  ;;  %p738_p5 = pnand %p467_p2, %p116_p3 }
   0x9   : > { %s128_s21 = sshll.u32 %s676_s20, 4  ;;  %s751_s23 = sadd.s32 1, %s674_s15   ;;  %s129_s21 = int_to_ptr.vmem [resolvable:$true] %s128_s21 }
   0xa   : > { %s865_s18 = scalar_select %p734_p4, 1, 0 }
   0xb   : > { %s866_s19 = scalar_select %p738_p5, 1, 0 }
   0xc   : > { %p526_p6 = pneg %p738_p5  ;;  %s66_s24 = sadd.s32 1, %s670_s14 }
   0xd   : > { %s63_s25 = ssub.s32 %s674_s15, %s751_s23  ;;  %s578_s28 = scalar_lea.hbm %s856_s0, 128 }
   0xe   : > { %p746_p7 = pnand %p526_p6, %p726_p1  ;;  %p579_p8 = scmp.ne.s32.totalorder %s856_s0, %s578_s28 }
   0xf   : > { %p585_p12 = scmp.lt.u32.totalorder %s578_s28, %s856_s0 }
  0x10   : > { %p580_p9 = pneg %p746_p7 }
  0x12   : > { %p581_p10 = pnand %p580_p9, %p579_p8 }
  0x14   : > { %p582_p11 = pneg %p581_p10 }
  0x16   : > { %p587_p13 = pnand %p585_p12, %p582_p11 }
  0x18   : > { %590 = shalt.err (!%p587_p13)
}
  0x19   : > { %s591_s6 = scalar_lea.vmem %s129_s21, 128  ;;  %p599_p6 = scmp.lt.s32.totalorder %s129_s21, %s129_s21 }
  0x1a   : > { %p592_p0 = scmp.ne.s32.totalorder %s129_s21, %s591_s6  ;;  %p600_p4 = scmp.lt.s32.totalorder %s591_s6, %s591_s6 }
  0x1c   : > { %p594_p2 = pnand %p592_p0, %p580_p9  ;;  %p601_p1 = por %p600_p4, %p599_p6 }
  0x1e   : > { %p595_p3 = pneg %p594_p2 }
  0x20   : > { %p602_p5 = pnand %p601_p1, %p595_p3 }
  0x22   : > { %605 = shalt.err (!%p602_p5)
}
  0x23   : > { %s677_s7 = smov 64   ;;  %s678_s8 = smov 4  }
  0x24   : > { %529 = dma.hbm_to_vmem [thread:$0]  (!%p746_p7), %s856_s0, 128, %s129_s21, [#allocation3], %s677_s7, %s677_s7, %s678_s8  }
  0x25   : > { %p64_p8 = scmp.eq.s32.totalorder %s63_s25, 0  ;;  %p73_p9 = scmp.ne.s32.totalorder %s670_s14, %s666_s13 }
  0x26   : > { %p74_p4 = scmp.eq.s32.totalorder %s674_s15, 0  ;;  %p535_p1 = scmp.lt.s32.totalorder %s674_s15, 4 }
  0x27   : > { %s777_s11 = scalar_select %p64_p8, %s670_s14, %s66_s24  }
  0x28   : > { %p75_p5 = por %p74_p4, %p73_p9  ;;  %s145_s12 = sand.u32 1, %s670_s14  }
  0x29   : > { %s470_s20 = sshll.u32 %s145_s12, 5  ;;  %s493_s26 = sshll.u32 %s674_s15, 9 }
  0x2a   : > { %s784_s29 = scalar_lea.hbm %s858_s2, %s493_s26  ;;  %s149_s21 = scalar_lea.vmem [#allocation4], %s470_s20 }
  0x2b   : > { %s157_s22 = sshll.u32 %s149_s21, 4  ;;  %p788_p7 = pnand %p535_p1, %p75_p5  ;;  %s786_s22 = int_to_ptr.vmem [resolvable:$true] %s157_s22 }
  0x2c   : > { %s792_s25 = scalar_lea.sflag [#allocation5], %s145_s12  ;;  %s606_s30 = scalar_lea.hbm %s784_s29, 512 }
  0x2d   : > { %p607_p10 = scmp.ne.s32.totalorder %s784_s29, %s606_s30  ;;  %p608_p11 = pneg %p788_p7 }
  0x2e   : > { %s611_s6 = scalar_lea.hbm %s858_s2, 2048  ;;  %p612_p0 = scmp.lt.u32.totalorder %s784_s29, %s858_s2 }
  0x2f   : > { %p609_p12 = pnand %p608_p11, %p607_p10  ;;  %p613_p2 = scmp.lt.u32.totalorder %s611_s6, %s606_s30 }
  0x30   : > { %p615_p6 = scmp.lt.u32.totalorder %s606_s30, %s784_s29 }
  0x31   : > { %p610_p13 = pneg %p609_p12  ;;  %p614_p3 = por %p613_p2, %p612_p0 }
  0x33   : > { %p616_p8 = por %p615_p6, %p614_p3 }
  0x35   : > { %p617_p9 = pnand %p616_p8, %p610_p13 }
  0x37   : > { %620 = shalt.err (!%p617_p9)
}
  0x38   : > { %s621_s9 = scalar_lea.vmem %s786_s22, 512  ;;  %s679_s10 = smov [#allocation4]  }
  0x39   : > { %p622_p4 = scmp.ne.s32.totalorder %s786_s22, %s621_s9  ;;  %s626_s12 = sshll.u32 %s679_s10, 4  ;;  %s627_s12 = int_to_ptr.vmem [resolvable:$false] %s626_s12 }
  0x3a   : > { %s628_s20 = scalar_lea.vmem %s627_s12, 1024  ;;  %p629_p10 = scmp.lt.s32.totalorder %s786_s22, %s627_s12 }
  0x3b   : > { %p624_p1 = pnand %p622_p4, %p608_p11  ;;  %p630_p12 = scmp.lt.s32.totalorder %s628_s20, %s621_s9 }
  0x3d   : > { %p625_p5 = pneg %p624_p1  ;;  %p631_p0 = por %p630_p12, %p629_p10 }
  0x3f   : > { %p632_p2 = pnand %p631_p0, %p625_p5 }
  0x41   : > { %635 = shalt.err (!%p632_p2)
}
  0x42   : > { %s680_s26 = smov 128   ;;  %s681_s27 = smov 8  }
  0x43   : > { %533 = dma.hbm_to_vmem [thread:$0]  (!%p788_p7), %s784_s29, 512, %s786_s22, %s792_s25, %s680_s26, %s680_s26, %s681_s27  }
  0x44   : > { %p869_p11 = scmp.ne.s32.totalorder %s866_s19, 0 }
  0x45   : > { %p870_p13 = scmp.ne.s32.totalorder (!%p869_p11), %s864_s17, 0 }
  0x46   : > { %169 = sbr.rel (%p869_p11) target bundleno = 521 (0x209), region = 32 }
  0x4d   : > { %653 = dma.done.wait (%p870_p13), [#allocation3], 128  }
  0x4e   : > { %655 = vsyncadd (%p870_p13), [#allocation3], 4294967168  ;;  %s175_s28 = sand.u32 1, %s666_s13   ;;  %p871_p3 = scmp.ne.s32.totalorder %s865_s18, 0 }
  0x4f   : > { %s476_s21 = sshll.u32 %s175_s28, 5  ;;  %s176_s30 = scalar_lea.sflag [#allocation5], %s175_s28 }
  0x50   : > { %s179_s4 = scalar_lea.vmem [#allocation4], %s476_s21 }
  0x51   : > { %657 = dma.done.wait (%p871_p3), %s176_s30, 512  }
  0x52   : > { %659 = vsyncadd (%p871_p3), %s176_s30, 4294966784  ;;  %v682_v0 = vmov 0.0   ;;  %vm683_vm0 = vmmov 0   ;;  %v216_v1 = vld [vmem:[%s179_s4] sm:$0xff]  ;;  %v217_v2 = vld [vmem:[%s179_s4 + $0x8] sm:$0xff]  ;;  %vm224_vm1 = vcmask 130048  }
  0x53   : > { %502 = vmatprep.subr.bf16.mxu0 %v682_v0  ;;  %508 = vmatprep.subr.bf16.mxu1 %v682_v0  ;;  %v482_v3 = vld [vmem:[%s179_s4 + $0x10] sm:$0xff]  ;;  %v218_v4 = vpack.c.bf16 %v217_v2, %v216_v1  ;;  %v483_v5 = vld [vmem:[%s179_s4 + $0x18] sm:$0xff]  ;;  %s477_s18 = sshll.u32 %s465_s16, 1  ;;  %vm377_vm2 = vcmask 97280   ;;  %vm379_vm3 = vcmask 93184  }
  0x54   : > { %504 = vmatprep.mubr.msk.bf16.mxu0 %vm683_vm0, %v682_v0  ;;  %510 = vmatprep.mubr.msk.bf16.mxu1 %vm683_vm0, %v682_v0  ;;  %v272_v6 = vpack.c.bf16 %v483_v5, %v482_v3  ;;  %v576_v7 = vld [vmem:[#allocation2] sm:$0xff]   ;;  %p205_p7 = scmp.lt.s32.totalorder %s477_s18, 7 }
  0x55   : > { %503 = vmatpush3.bf16.msra.mxu0 %v218_v4  ;;  %v577_v8 = vld [vmem:[%s857_s1] sm:$0xff]  }
  0x56   : > { %509 = vmatpush3.bf16.msra.mxu1 %v272_v6  ;;  %514 = vmatprep.subr.bf16.mxu0 %v577_v8  ;;  %s877_s18 = smov (!%p205_p7, %s477_s18), 7 }
  0x57   : > { %s494_s29 = sshll.u32 %s877_s18, 4 }
  0x58   : > { %505 = vmatmul.mubr.msk.bf16.vlgmr.msra.gmra.mrb[0].mxu0 %vm224_vm1, %v576_v7  ;;  %s209_s25 = scalar_lea.vmem %s859_s3, %s494_s29 }
  0x59   : > { %511 = vmatmul.mubr.msk.bf16.vlgmr.msra.gmra.mrb[0].mxu1 %vm224_vm1, %v576_v7  ;;  %515 = vmatpush3.bf16.msra.mxu0 %v577_v8 }
 0x12b   : > { %v262_v9 = vpop.f32.mrb[0].mxu0 }
 0x12c   : > { %v307_v10 = vpop.f32.mrb[0].mxu1  ;;  %v506_v11 = vpop.f32.mrb[1].mxu0 }
 0x12d   : > { %v512_v12 = vpop.f32.mrb[1].mxu1  ;;  %v265_v13 = vpop.f32.mrb[2].mxu0 }
 0x12e   : > { %v314_v14 = vpack.c.bf16 %v265_v13, %v262_v9  ;;  %v310_v15 = vpop.f32.mrb[2].mxu1  ;;  %v507_v16 = vpop.f32.mrb[3].mxu0 }
 0x12f   : > { %v315_v17 = vpack.c.bf16 %v310_v15, %v307_v10  ;;  %v513_v18 = vpop.f32.mrb[3].mxu1 }
 0x130   : > { %516 = vmatprep.mubr.msk.bf16.mxu0 %vm224_vm1, %v314_v14 }
 0x131   : > { %517 = vmatmul.mubr.msk.bf16.vlgmr.msra.gmra.mrb[4].mxu0 %vm224_vm1, %v315_v17 }
 0x204   : > { %v518_v19 = vpop.f32.mrb[4].mxu0 }
 0x205   : > { %v362_v20 = vpop.f32.mrb[5].mxu0  ;;  %488 = vst.msk [vmem:[%s209_s25 + $0x10] sm:$0xff] %vm377_vm2, %v518_v19 }
 0x206   : > { %378 = vst.msk [vmem:[%s209_s25] sm:$0xff] %vm377_vm2, %v362_v20  ;;  %v519_v21 = vpop.f32.mrb[6].mxu0 }
 0x207   : > { %v365_v22 = vpop.f32.mrb[7].mxu0  ;;  %489 = vst.msk [vmem:[%s209_s25 + $0x18] sm:$0xf] %vm379_vm3, %v519_v21 }
 0x208   : > { %380 = vst.msk [vmem:[%s209_s25 + $0x8] sm:$0xf] %vm379_vm3, %v365_v22 }
 0x209 PF: > { %p14_p6 = scmp.ge.s32.totalorder %s751_s23, 6   ;;  %s872_s12 = smov %s666_s13 }
 0x20a   : > { %s873_s13 = smov %s670_s14  ;;  %s874_s14 = smov %s777_s11 }
 0x20b   : > { %s875_s15 = smov %s751_s23  ;;  %16 = sbr.rel (!%p14_p6) target bundleno = 4 (0x4), region = 79 }
 0x212   :  { %408 = vsyncpa [#allocation3], 1 }
 0x213   :  { %410 = vsyncpa [#allocation3 + $0x1], 1 }
 0x214   :  { %411 = vsyncpa [#allocation5], 1 }
 0x215   :  { %413 = vsyncpa [#allocation5 + $0x1], 1 }

</bundles_post_ra>
